<compile_context>
chip_gen: v6e
topology: v6e:2x2x1
jax: 0.10.0
libtpu: 0.0.40
codegen_flags: <defaults>
</compile_context>

<pallas_src>
import functools

import jax
import jax.numpy as jnp
from jax.experimental import pallas as pl
from jax.experimental.pallas import tpu as pltpu

HIDDEN = 256          # width of layers 0..3
TAIL = 128            # padded lane width of layers 4/5 (real width 32)
OUT_CHANNELS = 32
EPS = 1e-5

# Per-layer (in, out) dims of the 6 Linear layers of TimeEncoder.
LAYER_DIMS = [(1, 256), (256, 256), (256, 256), (256, 256), (256, 32), (32, 32)]


# ----------------------------------------------------------------------------
# Kernel
# ----------------------------------------------------------------------------
def time_encoder_kernel(t_ref, w_ref, gb_ref, w4_ref, w5_ref, sp0_ref, gb45_ref,
                        out_ref, x_sc):
    """Grid axis l = 0..2 processes 256x256 layer l+1.

    t_ref   : (B, 1)        f32   time input
    w_ref   : (1, 256, 256) bf16  weight of layer l+1 (grid-indexed slab)
    gb_ref  : (1, 2, 256)   f32   [gamma, beta] of layer l+1 (grid-indexed)
    w4_ref  : (256, 128)    bf16  layer-4 weight, cols 32.. zero-padded
    w5_ref  : (128, 128)    bf16  layer-5 weight, rows/cols 32.. zero-padded
    sp0_ref : (8, 256)      f32   row0 = layer-0 weight, row1/2 = gamma0/beta0
    gb45_ref: (8, 128)      f32   rows 0..3 = gamma4, beta4, gamma5, beta5
    out_ref : (B, 128)      f32   final activations (cols 32.. are zero)
    x_sc    : (B, 256)      bf16  activation carried across grid steps
    """
    l = pl.program_id(0)

    def bn_relu(y, g, be):
        # Training-mode BatchNorm (biased variance) + ReLU.  Linear biases are
        # dropped upstream: they cancel exactly under the mean subtraction.
        mean = jnp.mean(y, axis=0, keepdims=True)
        yc = y - mean
        var = jnp.mean(yc * yc, axis=0, keepdims=True)
        scale = g * jax.lax.rsqrt(var + EPS)
        return jnp.maximum(yc * scale + be, 0.0)

    # ---- step 0 only: block-1/fc1 (1 -> 256) with analytic batch statistics.
    # y = t*w0 (+b0, cancelled) => mean_y = mean_t*w0, var_y = var_t*w0^2.
    @pl.when(l == 0)
    def _():
        t = t_ref[...]                                        # (B, 1) f32
        w0 = sp0_ref[0:1, :]                                  # (1, 256)
        g0 = sp0_ref[1:2, :]
        be0 = sp0_ref[2:3, :]
        mean_t = jnp.mean(t, axis=0, keepdims=True)           # (1, 1)
        var_t = jnp.mean((t - mean_t) ** 2, axis=0, keepdims=True)
        scale0 = g0 * jax.lax.rsqrt(var_t * (w0 * w0) + EPS)  # (1, 256)
        x0 = jnp.maximum((t - mean_t) * (w0 * scale0) + be0, 0.0)
        x_sc[...] = x0.astype(jnp.bfloat16)

    # ---- layer l+1 (1..3): 256x256 bf16 matmul + fused BN/ReLU -------------
    w = w_ref[0]                                              # (256, 256) bf16
    gb = gb_ref[0]                                            # (2, 256) f32
    y = jnp.dot(x_sc[...], w, preferred_element_type=jnp.float32)  # (B,256) f32
    x_sc[...] = bn_relu(y, gb[0:1, :], gb[1:2, :]).astype(jnp.bfloat16)

    # ---- last step: block-3 (256 -> 32 -> 32), padded to 128 lanes ---------
    @pl.when(l == pl.num_programs(0) - 1)
    def _():
        y4 = jnp.dot(x_sc[...], w4_ref[...],
                     preferred_element_type=jnp.float32)      # (B, 128) f32
        x4 = bn_relu(y4, gb45_ref[0:1, :], gb45_ref[1:2, :])  # padded lanes stay 0
        y5 = jnp.dot(x4.astype(jnp.bfloat16), w5_ref[...],
                     preferred_element_type=jnp.float32)      # (B, 128) f32
        out_ref[...] = bn_relu(y5, gb45_ref[2:3, :], gb45_ref[3:4, :])


# ----------------------------------------------------------------------------
# Parameters: natural (per-layer) form + packed form fed to the kernel
# ----------------------------------------------------------------------------
def init_params(key):
    """Deterministic synthetic parameters, one (w, b, gamma, beta) per layer."""
    params = []
    for (fi, fo) in LAYER_DIMS:
        key, kw, kb, kg, kbe = jax.random.split(key, 5)
        scale = 1.0 / jnp.sqrt(jnp.float32(fi))
        w = jax.random.normal(kw, (fi, fo), jnp.float32) * scale
        b = jax.random.normal(kb, (fo,), jnp.float32) * 0.1
        gamma = 1.0 + 0.1 * jax.random.normal(kg, (fo,), jnp.float32)
        beta = 0.1 * jax.random.normal(kbe, (fo,), jnp.float32)
        params.append((w, b, gamma, beta))
    return params


def pack_params(params):
    """Pack into the 6 kernel parameter refs (biases dropped: they cancel
    under training-mode BatchNorm)."""
    # Three 256x256 weights (layers 1..3), bf16.
    w_stack = jnp.stack([params[l][0] for l in (1, 2, 3)], 0).astype(jnp.bfloat16)
    # gamma/beta of layers 1..3, grid-indexed alongside w_stack.
    gb_stack = jnp.stack(
        [jnp.stack([params[l][2], params[l][3]], 0) for l in (1, 2, 3)], 0
    ).astype(jnp.float32)                                            # (3, 2, 256)
    # Tail weights padded to 128 lanes.
    w4 = jnp.zeros((HIDDEN, TAIL), jnp.float32).at[:, :OUT_CHANNELS].set(
        params[4][0]).astype(jnp.bfloat16)                           # (256, 128)
    w5 = jnp.zeros((TAIL, TAIL), jnp.float32).at[:OUT_CHANNELS, :OUT_CHANNELS].set(
        params[5][0]).astype(jnp.bfloat16)                           # (128, 128)
    # Layer-0 weight + gamma/beta.
    sp0 = jnp.zeros((8, HIDDEN), jnp.float32)
    sp0 = sp0.at[0].set(params[0][0].reshape(HIDDEN))
    sp0 = sp0.at[1].set(params[0][2])
    sp0 = sp0.at[2].set(params[0][3])
    # gamma/beta of layers 4/5, zero-padded to 128 lanes.
    gb45 = jnp.zeros((8, TAIL), jnp.float32)
    gb45 = gb45.at[0, :OUT_CHANNELS].set(params[4][2])
    gb45 = gb45.at[1, :OUT_CHANNELS].set(params[4][3])
    gb45 = gb45.at[2, :OUT_CHANNELS].set(params[5][2])
    gb45 = gb45.at[3, :OUT_CHANNELS].set(params[5][3])
    return w_stack, gb_stack, w4, w5, sp0, gb45


# ----------------------------------------------------------------------------
# Wrapper
# ----------------------------------------------------------------------------
@functools.partial(jax.jit, static_argnames=("expand_to_image",))
def time_encoder(t, packed_params, expand_to_image=True):
    w_stack, gb_stack, w4, w5, sp0, gb45 = packed_params
    if t.ndim == 1:
        t = t[:, None]                         # (B,) -> (B, 1), like unsqueeze(1)
    t = t.astype(jnp.float32)
    B = t.shape[0]

    inputs = (t, w_stack, gb_stack, w4, w5, sp0, gb45)
    in_bytes = sum(int(a.size) * a.dtype.itemsize for a in inputs)
    out_bytes = B * TAIL * 4
    cost = pl.CostEstimate(
        flops=2 * B * (3 * HIDDEN * HIDDEN + HIDDEN * TAIL + TAIL * TAIL)
              + 12 * B * HIDDEN,
        transcendentals=4 * HIDDEN + 2 * TAIL,
        bytes_accessed=in_bytes + out_bytes,
    )

    # VMEM budget: double-buffered per-step weight slab + resident small refs
    # + bf16 activation scratch + f32 epilogue temporaries + headroom.
    grid_block_bytes = HIDDEN * HIDDEN * 2 + 2 * HIDDEN * 4
    resident_bytes = (int(t.size) * 4 + int(w4.size) * 2 + int(w5.size) * 2
                      + int(sp0.size) * 4 + int(gb45.size) * 4 + out_bytes)
    scratch_bytes = B * HIDDEN * 2
    temp_bytes = 8 * B * HIDDEN * 4
    vmem_limit = int(min(2 * grid_block_bytes + 2 * resident_bytes
                         + scratch_bytes + temp_bytes + (1 << 22), 100 << 20))

    out = pl.pallas_call(
        time_encoder_kernel,
        out_shape=jax.ShapeDtypeStruct((B, TAIL), jnp.float32),
        grid_spec=pltpu.PrefetchScalarGridSpec(
            num_scalar_prefetch=0,
            grid=(3,),
            in_specs=[
                pl.BlockSpec((B, 1), lambda l: (0, 0)),
                pl.BlockSpec((1, HIDDEN, HIDDEN), lambda l: (l, 0, 0)),
                pl.BlockSpec((1, 2, HIDDEN), lambda l: (l, 0, 0)),
                pl.BlockSpec((HIDDEN, TAIL), lambda l: (0, 0)),
                pl.BlockSpec((TAIL, TAIL), lambda l: (0, 0)),
                pl.BlockSpec((8, HIDDEN), lambda l: (0, 0)),
                pl.BlockSpec((8, TAIL), lambda l: (0, 0)),
            ],
            out_specs=pl.BlockSpec((B, TAIL), lambda l: (0, 0)),
            scratch_shapes=[pltpu.VMEM((B, HIDDEN), jnp.bfloat16)],
        ),
        compiler_params=pltpu.CompilerParams(
            dimension_semantics=("arbitrary",),
            vmem_limit_bytes=vmem_limit),
        cost_estimate=cost,
    )(*inputs)

    out = out[:, :OUT_CHANNELS]                # drop the lane padding
    if expand_to_image:
        out = jnp.broadcast_to(out[:, :, None, None], (B, OUT_CHANNELS, 28, 28))
    return out


# ----------------------------------------------------------------------------
# References
# ----------------------------------------------------------------------------
def reference_f32(t, params):
    """Exact f32 PyTorch-semantics reference (training-mode BN, biased var)."""
    if t.ndim == 1:
        t = t[:, None]
    x = t.astype(jnp.float32)
    for (w, b, g, be) in params:
        y = x @ w + b
        mean = jnp.mean(y, axis=0, keepdims=True)
        var = jnp.mean((y - mean) ** 2, axis=0, keepdims=True)
        x = jnp.maximum((y - mean) / jnp.sqrt(var + EPS) * g + be, 0.0)
    return x


def reference_bf16(t, params):
    """Reference mirroring the kernel numerics (bias-free, bf16 matmul
    operands, centered-variance BN in f32)."""
    if t.ndim == 1:
        t = t[:, None]
    x = t.astype(jnp.float32)
    for l, (w, b, g, be) in enumerate(params):
        if l == 0:
            y = x * w.reshape(1, -1)           # bias dropped (cancels under BN)
        else:
            y = jnp.dot(x.astype(jnp.bfloat16), w.astype(jnp.bfloat16),
                        preferred_element_type=jnp.float32)
        mean = jnp.mean(y, axis=0, keepdims=True)
        yc = y - mean
        var = jnp.mean(yc * yc, axis=0, keepdims=True)
        x = jnp.maximum(yc * (g * jax.lax.rsqrt(var + EPS)) + be, 0.0)
    return x


# ----------------------------------------------------------------------------
if __name__ == "__main__":
    key = jax.random.PRNGKey(0)
    key, kt = jax.random.split(key)
    B = 8                                      # BN batch stats need B > 1
    t = jax.random.uniform(kt, (B,), jnp.float32)
    params = init_params(key)
    packed = pack_params(params)

    out = time_encoder(t, packed, expand_to_image=True)
    out = jax.block_until_ready(out)
    assert out.shape == (B, OUT_CHANNELS, 28, 28), out.shape

    flat = out[:, :, 0, 0]                     # image expand is a pure broadcast
    ref_b = reference_bf16(t, params)          # same numerics as the kernel
    ref_f = reference_f32(t, params)           # exact f32 module semantics

    assert jnp.allclose(flat, ref_b, rtol=5e-3, atol=5e-3), \
        float(jnp.max(jnp.abs(flat - ref_b)))
    assert jnp.allclose(flat, ref_f, rtol=1e-1, atol=1e-1), \
        float(jnp.max(jnp.abs(flat - ref_f)))

    print("KERNEL_OK")
</pallas_src>

<mosaic_0001>
module attributes {stable_mosaic.version = 11 : i64} {
  func.func @time_encoder_kernel(%arg0: i32, %arg1: memref<8x1xf32, #tpu.memory_space<vmem>>, %arg2: memref<1x256x256xbf16, #tpu.memory_space<vmem>>, %arg3: memref<1x2x256xf32, #tpu.memory_space<vmem>>, %arg4: memref<256x128xbf16, #tpu.memory_space<vmem>>, %arg5: memref<128x128xbf16, #tpu.memory_space<vmem>>, %arg6: memref<8x256xf32, #tpu.memory_space<vmem>>, %arg7: memref<8x128xf32, #tpu.memory_space<vmem>>, %arg8: memref<8x128xf32, #tpu.memory_space<vmem>>, %arg9: memref<8x256xbf16, #tpu.memory_space<vmem>>) attributes {dimension_semantics = [#tpu.dimension_semantics<arbitrary>], iteration_bounds = array<i64: 3>, scalar_prefetch = 0 : i64, scratch_operands = 1 : i64, tpu.core_type = #tpu.core_type<tc>, window_params = [{pipeline_mode = #tpu.pipeline_mode<synchronous>, transform_indices = @transform_0, window_bounds = array<i64: 8, 1>}, {transform_indices = @transform_1, window_bounds = array<i64: 1, 256, 256>}, {transform_indices = @transform_2, window_bounds = array<i64: 1, 2, 256>}, {pipeline_mode = #tpu.pipeline_mode<synchronous>, transform_indices = @transform_3, window_bounds = array<i64: 256, 128>}, {pipeline_mode = #tpu.pipeline_mode<synchronous>, transform_indices = @transform_4, window_bounds = array<i64: 128, 128>}, {pipeline_mode = #tpu.pipeline_mode<synchronous>, transform_indices = @transform_5, window_bounds = array<i64: 8, 256>}, {pipeline_mode = #tpu.pipeline_mode<synchronous>, transform_indices = @transform_6, window_bounds = array<i64: 8, 128>}, {pipeline_mode = #tpu.pipeline_mode<synchronous>, transform_indices = @transform_7, window_bounds = array<i64: 8, 128>}]} {
    %c0_i32 = arith.constant 0 : i32
    %0 = arith.cmpi eq, %arg0, %c0_i32 : i32
    %1 = arith.extui %0 : i1 to i32
    %c0_i32_0 = arith.constant 0 : i32
    %2 = arith.cmpi ne, %1, %c0_i32_0 : i32
    scf.if %2 {
      %c0_17 = arith.constant 0 : index
      %c0_18 = arith.constant 0 : index
      %37 = vector.load %arg1[%c0_17, %c0_18] : memref<8x1xf32, #tpu.memory_space<vmem>>, vector<8x1xf32>
      %c0_19 = arith.constant 0 : index
      %c0_20 = arith.constant 0 : index
      %38 = vector.load %arg6[%c0_19, %c0_20] : memref<8x256xf32, #tpu.memory_space<vmem>>, vector<1x256xf32>
      %c1 = arith.constant 1 : index
      %c0_21 = arith.constant 0 : index
      %39 = vector.load %arg6[%c1, %c0_21] : memref<8x256xf32, #tpu.memory_space<vmem>>, vector<1x256xf32>
      %c2 = arith.constant 2 : index
      %c0_22 = arith.constant 0 : index
      %40 = vector.load %arg6[%c2, %c0_22] : memref<8x256xf32, #tpu.memory_space<vmem>>, vector<1x256xf32>
      %cst_23 = arith.constant dense<0.000000e+00> : vector<1xf32>
      %41 = vector.multi_reduction <add>, %37, %cst_23 [0] : vector<8x1xf32> to vector<1xf32>
      %42 = vector.shape_cast %41 : vector<1xf32> to vector<1x1xf32>
      %cst_24 = arith.constant 8.000000e+00 : f32
      %43 = vector.broadcast %cst_24 : f32 to vector<1x1xf32>
      %44 = arith.divf %42, %43 : vector<1x1xf32>
      %45 = vector.broadcast %44 : vector<1x1xf32> to vector<8x1xf32>
      %46 = arith.subf %37, %45 : vector<8x1xf32>
      %47 = arith.mulf %46, %46 : vector<8x1xf32>
      %cst_25 = arith.constant dense<0.000000e+00> : vector<1xf32>
      %48 = vector.multi_reduction <add>, %47, %cst_25 [0] : vector<8x1xf32> to vector<1xf32>
      %49 = vector.shape_cast %48 : vector<1xf32> to vector<1x1xf32>
      %cst_26 = arith.constant 8.000000e+00 : f32
      %50 = vector.broadcast %cst_26 : f32 to vector<1x1xf32>
      %51 = arith.divf %49, %50 : vector<1x1xf32>
      %52 = arith.mulf %38, %38 : vector<1x256xf32>
      %53 = vector.broadcast %51 : vector<1x1xf32> to vector<1x256xf32>
      %54 = arith.mulf %53, %52 : vector<1x256xf32>
      %cst_27 = arith.constant 9.99999974E-6 : f32
      %55 = vector.broadcast %cst_27 : f32 to vector<1x256xf32>
      %56 = arith.addf %54, %55 : vector<1x256xf32>
      %57 = math.rsqrt %56 : vector<1x256xf32>
      %58 = arith.mulf %39, %57 : vector<1x256xf32>
      %59 = vector.broadcast %44 : vector<1x1xf32> to vector<8x1xf32>
      %60 = arith.subf %37, %59 : vector<8x1xf32>
      %61 = arith.mulf %38, %58 : vector<1x256xf32>
      %62 = vector.broadcast %60 : vector<8x1xf32> to vector<8x256xf32>
      %63 = vector.broadcast %61 : vector<1x256xf32> to vector<8x256xf32>
      %64 = arith.mulf %62, %63 : vector<8x256xf32>
      %65 = vector.broadcast %40 : vector<1x256xf32> to vector<8x256xf32>
      %66 = arith.addf %64, %65 : vector<8x256xf32>
      %cst_28 = arith.constant 0.000000e+00 : f32
      %67 = vector.broadcast %cst_28 : f32 to vector<8x256xf32>
      %68 = arith.maximumf %66, %67 : vector<8x256xf32>
      %69 = arith.truncf %68 : vector<8x256xf32> to vector<8x256xbf16>
      %c0_29 = arith.constant 0 : index
      %c0_30 = arith.constant 0 : index
      %70 = vector.load %arg9[%c0_29, %c0_30] : memref<8x256xbf16, #tpu.memory_space<vmem>>, vector<8x256xbf16>
      tpu.vector_store %arg9[%c0_29, %c0_30], %69 {strides = array<i32>} : memref<8x256xbf16, #tpu.memory_space<vmem>>, vector<8x256xbf16>,
    } else {
    }
    %c0 = arith.constant 0 : index
    %c0_1 = arith.constant 0 : index
    %c0_2 = arith.constant 0 : index
    %3 = vector.load %arg2[%c0, %c0_1, %c0_2] : memref<1x256x256xbf16, #tpu.memory_space<vmem>>, vector<1x256x256xbf16>
    %4 = vector.shape_cast %3 : vector<1x256x256xbf16> to vector<256x256xbf16>
    %c0_3 = arith.constant 0 : index
    %c0_4 = arith.constant 0 : index
    %c0_5 = arith.constant 0 : index
    %5 = vector.load %arg3[%c0_3, %c0_4, %c0_5] : memref<1x2x256xf32, #tpu.memory_space<vmem>>, vector<1x2x256xf32>
    %6 = vector.shape_cast %5 : vector<1x2x256xf32> to vector<2x256xf32>
    %c0_6 = arith.constant 0 : index
    %c0_7 = arith.constant 0 : index
    %7 = vector.load %arg9[%c0_6, %c0_7] : memref<8x256xbf16, #tpu.memory_space<vmem>>, vector<8x256xbf16>
    %cst = arith.constant dense<0.000000e+00> : vector<8x256xf32>
    %8 = tpu.matmul %7, %4, %cst {dimension_numbers = #tpu.dot_dimension_numbers<[1], [0], [0], [1], [0, 0, 1, 1], [], []>} : vector<8x256xbf16>, vector<256x256xbf16>, vector<8x256xf32> -> vector<8x256xf32>
    %9 = vector.extract_strided_slice %6 {offsets = [0, 0], sizes = [1, 256], strides = [1, 1]} : vector<2x256xf32> to vector<1x256xf32>
    %10 = vector.extract_strided_slice %6 {offsets = [1, 0], sizes = [1, 256], strides = [1, 1]} : vector<2x256xf32> to vector<1x256xf32>
    %cst_8 = arith.constant dense<0.000000e+00> : vector<256xf32>
    %11 = vector.multi_reduction <add>, %8, %cst_8 [0] : vector<8x256xf32> to vector<256xf32>
    %12 = vector.shape_cast %11 : vector<256xf32> to vector<1x256xf32>
    %cst_9 = arith.constant 8.000000e+00 : f32
    %13 = vector.broadcast %cst_9 : f32 to vector<1x256xf32>
    %14 = arith.divf %12, %13 : vector<1x256xf32>
    %15 = vector.broadcast %14 : vector<1x256xf32> to vector<8x256xf32>
    %16 = arith.subf %8, %15 : vector<8x256xf32>
    %17 = arith.mulf %16, %16 : vector<8x256xf32>
    %cst_10 = arith.constant dense<0.000000e+00> : vector<256xf32>
    %18 = vector.multi_reduction <add>, %17, %cst_10 [0] : vector<8x256xf32> to vector<256xf32>
    %19 = vector.shape_cast %18 : vector<256xf32> to vector<1x256xf32>
    %cst_11 = arith.constant 8.000000e+00 : f32
    %20 = vector.broadcast %cst_11 : f32 to vector<1x256xf32>
    %21 = arith.divf %19, %20 : vector<1x256xf32>
    %cst_12 = arith.constant 9.99999974E-6 : f32
    %22 = vector.broadcast %cst_12 : f32 to vector<1x256xf32>
    %23 = arith.addf %21, %22 : vector<1x256xf32>
    %24 = math.rsqrt %23 : vector<1x256xf32>
    %25 = arith.mulf %9, %24 : vector<1x256xf32>
    %26 = vector.broadcast %25 : vector<1x256xf32> to vector<8x256xf32>
    %27 = arith.mulf %16, %26 : vector<8x256xf32>
    %28 = vector.broadcast %10 : vector<1x256xf32> to vector<8x256xf32>
    %29 = arith.addf %27, %28 : vector<8x256xf32>
    %cst_13 = arith.constant 0.000000e+00 : f32
    %30 = vector.broadcast %cst_13 : f32 to vector<8x256xf32>
    %31 = arith.maximumf %29, %30 : vector<8x256xf32>
    %32 = arith.truncf %31 : vector<8x256xf32> to vector<8x256xbf16>
    %c0_14 = arith.constant 0 : index
    %c0_15 = arith.constant 0 : index
    %33 = vector.load %arg9[%c0_14, %c0_15] : memref<8x256xbf16, #tpu.memory_space<vmem>>, vector<8x256xbf16>
    tpu.vector_store %arg9[%c0_14, %c0_15], %32 {strides = array<i32>} : memref<8x256xbf16, #tpu.memory_space<vmem>>, vector<8x256xbf16>,
    %c2_i32 = arith.constant 2 : i32
    %34 = arith.cmpi eq, %arg0, %c2_i32 : i32
    %35 = arith.extui %34 : i1 to i32
    %c0_i32_16 = arith.constant 0 : i32
    %36 = arith.cmpi ne, %35, %c0_i32_16 : i32
    scf.if %36 {
      %c0_17 = arith.constant 0 : index
      %c0_18 = arith.constant 0 : index
      %37 = vector.load %arg9[%c0_17, %c0_18] : memref<8x256xbf16, #tpu.memory_space<vmem>>, vector<8x256xbf16>
      %c0_19 = arith.constant 0 : index
      %c0_20 = arith.constant 0 : index
      %38 = vector.load %arg4[%c0_19, %c0_20] : memref<256x128xbf16, #tpu.memory_space<vmem>>, vector<256x128xbf16>
      %cst_21 = arith.constant dense<0.000000e+00> : vector<8x128xf32>
      %39 = tpu.matmul %37, %38, %cst_21 {dimension_numbers = #tpu.dot_dimension_numbers<[1], [0], [0], [1], [0, 0, 1, 1], [], []>} : vector<8x256xbf16>, vector<256x128xbf16>, vector<8x128xf32> -> vector<8x128xf32>
      %c0_22 = arith.constant 0 : index
      %c0_23 = arith.constant 0 : index
      %40 = vector.load %arg7[%c0_22, %c0_23] : memref<8x128xf32, #tpu.memory_space<vmem>>, vector<1x128xf32>
      %c1 = arith.constant 1 : index
      %c0_24 = arith.constant 0 : index
      %41 = vector.load %arg7[%c1, %c0_24] : memref<8x128xf32, #tpu.memory_space<vmem>>, vector<1x128xf32>
      %cst_25 = arith.constant dense<0.000000e+00> : vector<128xf32>
      %42 = vector.multi_reduction <add>, %39, %cst_25 [0] : vector<8x128xf32> to vector<128xf32>
      %43 = vector.shape_cast %42 : vector<128xf32> to vector<1x128xf32>
      %cst_26 = arith.constant 8.000000e+00 : f32
      %44 = vector.broadcast %cst_26 : f32 to vector<1x128xf32>
      %45 = arith.divf %43, %44 : vector<1x128xf32>
      %46 = vector.broadcast %45 : vector<1x128xf32> to vector<8x128xf32>
      %47 = arith.subf %39, %46 : vector<8x128xf32>
      %48 = arith.mulf %47, %47 : vector<8x128xf32>
      %cst_27 = arith.constant dense<0.000000e+00> : vector<128xf32>
      %49 = vector.multi_reduction <add>, %48, %cst_27 [0] : vector<8x128xf32> to vector<128xf32>
      %50 = vector.shape_cast %49 : vector<128xf32> to vector<1x128xf32>
      %cst_28 = arith.constant 8.000000e+00 : f32
      %51 = vector.broadcast %cst_28 : f32 to vector<1x128xf32>
      %52 = arith.divf %50, %51 : vector<1x128xf32>
      %cst_29 = arith.constant 9.99999974E-6 : f32
      %53 = vector.broadcast %cst_29 : f32 to vector<1x128xf32>
      %54 = arith.addf %52, %53 : vector<1x128xf32>
      %55 = math.rsqrt %54 : vector<1x128xf32>
      %56 = arith.mulf %40, %55 : vector<1x128xf32>
      %57 = vector.broadcast %56 : vector<1x128xf32> to vector<8x128xf32>
      %58 = arith.mulf %47, %57 : vector<8x128xf32>
      %59 = vector.broadcast %41 : vector<1x128xf32> to vector<8x128xf32>
      %60 = arith.addf %58, %59 : vector<8x128xf32>
      %cst_30 = arith.constant 0.000000e+00 : f32
      %61 = vector.broadcast %cst_30 : f32 to vector<8x128xf32>
      %62 = arith.maximumf %60, %61 : vector<8x128xf32>
      %63 = arith.truncf %62 : vector<8x128xf32> to vector<8x128xbf16>
      %c0_31 = arith.constant 0 : index
      %c0_32 = arith.constant 0 : index
      %64 = vector.load %arg5[%c0_31, %c0_32] : memref<128x128xbf16, #tpu.memory_space<vmem>>, vector<128x128xbf16>
      %cst_33 = arith.constant dense<0.000000e+00> : vector<8x128xf32>
      %65 = tpu.matmul %63, %64, %cst_33 {dimension_numbers = #tpu.dot_dimension_numbers<[1], [0], [0], [1], [0, 0, 1, 1], [], []>} : vector<8x128xbf16>, vector<128x128xbf16>, vector<8x128xf32> -> vector<8x128xf32>
      %c2 = arith.constant 2 : index
      %c0_34 = arith.constant 0 : index
      %66 = vector.load %arg7[%c2, %c0_34] : memref<8x128xf32, #tpu.memory_space<vmem>>, vector<1x128xf32>
      %c3 = arith.constant 3 : index
      %c0_35 = arith.constant 0 : index
      %67 = vector.load %arg7[%c3, %c0_35] : memref<8x128xf32, #tpu.memory_space<vmem>>, vector<1x128xf32>
      %cst_36 = arith.constant dense<0.000000e+00> : vector<128xf32>
      %68 = vector.multi_reduction <add>, %65, %cst_36 [0] : vector<8x128xf32> to vector<128xf32>
      %69 = vector.shape_cast %68 : vector<128xf32> to vector<1x128xf32>
      %cst_37 = arith.constant 8.000000e+00 : f32
      %70 = vector.broadcast %cst_37 : f32 to vector<1x128xf32>
      %71 = arith.divf %69, %70 : vector<1x128xf32>
      %72 = vector.broadcast %71 : vector<1x128xf32> to vector<8x128xf32>
      %73 = arith.subf %65, %72 : vector<8x128xf32>
      %74 = arith.mulf %73, %73 : vector<8x128xf32>
      %cst_38 = arith.constant dense<0.000000e+00> : vector<128xf32>
      %75 = vector.multi_reduction <add>, %74, %cst_38 [0] : vector<8x128xf32> to vector<128xf32>
      %76 = vector.shape_cast %75 : vector<128xf32> to vector<1x128xf32>
      %cst_39 = arith.constant 8.000000e+00 : f32
      %77 = vector.broadcast %cst_39 : f32 to vector<1x128xf32>
      %78 = arith.divf %76, %77 : vector<1x128xf32>
      %cst_40 = arith.constant 9.99999974E-6 : f32
      %79 = vector.broadcast %cst_40 : f32 to vector<1x128xf32>
      %80 = arith.addf %78, %79 : vector<1x128xf32>
      %81 = math.rsqrt %80 : vector<1x128xf32>
      %82 = arith.mulf %66, %81 : vector<1x128xf32>
      %83 = vector.broadcast %82 : vector<1x128xf32> to vector<8x128xf32>
      %84 = arith.mulf %73, %83 : vector<8x128xf32>
      %85 = vector.broadcast %67 : vector<1x128xf32> to vector<8x128xf32>
      %86 = arith.addf %84, %85 : vector<8x128xf32>
      %cst_41 = arith.constant 0.000000e+00 : f32
      %87 = vector.broadcast %cst_41 : f32 to vector<8x128xf32>
      %88 = arith.maximumf %86, %87 : vector<8x128xf32>
      %c0_42 = arith.constant 0 : index
      %c0_43 = arith.constant 0 : index
      %89 = vector.load %arg8[%c0_42, %c0_43] : memref<8x128xf32, #tpu.memory_space<vmem>>, vector<8x128xf32>
      tpu.vector_store %arg8[%c0_42, %c0_43], %88 {strides = array<i32>} : memref<8x128xf32, #tpu.memory_space<vmem>>, vector<8x128xf32>,
    } else {
    }
    return
  }
  func.func @transform_0(%arg0: i32) -> (i32, i32) {
    %c0_i32 = arith.constant 0 : i32
    %c0_i32_0 = arith.constant 0 : i32
    %c0_i32_1 = arith.constant 0 : i32
    return %c0_i32, %c0_i32_0 : i32, i32
  }
  func.func @transform_1(%arg0: i32) -> (i32, i32, i32) {
    %c0_i32 = arith.constant 0 : i32
    %c0_i32_0 = arith.constant 0 : i32
    %c0_i32_1 = arith.constant 0 : i32
    return %arg0, %c0_i32, %c0_i32_0 : i32, i32, i32
  }
  func.func @transform_2(%arg0: i32) -> (i32, i32, i32) {
    %c0_i32 = arith.constant 0 : i32
    %c0_i32_0 = arith.constant 0 : i32
    %c0_i32_1 = arith.constant 0 : i32
    return %arg0, %c0_i32, %c0_i32_0 : i32, i32, i32
  }
  func.func @transform_3(%arg0: i32) -> (i32, i32) {
    %c0_i32 = arith.constant 0 : i32
    %c0_i32_0 = arith.constant 0 : i32
    %c0_i32_1 = arith.constant 0 : i32
    return %c0_i32, %c0_i32_0 : i32, i32
  }
  func.func @transform_4(%arg0: i32) -> (i32, i32) {
    %c0_i32 = arith.constant 0 : i32
    %c0_i32_0 = arith.constant 0 : i32
    %c0_i32_1 = arith.constant 0 : i32
    return %c0_i32, %c0_i32_0 : i32, i32
  }
  func.func @transform_5(%arg0: i32) -> (i32, i32) {
    %c0_i32 = arith.constant 0 : i32
    %c0_i32_0 = arith.constant 0 : i32
    %c0_i32_1 = arith.constant 0 : i32
    return %c0_i32, %c0_i32_0 : i32, i32
  }
  func.func @transform_6(%arg0: i32) -> (i32, i32) {
    %c0_i32 = arith.constant 0 : i32
    %c0_i32_0 = arith.constant 0 : i32
    %c0_i32_1 = arith.constant 0 : i32
    return %c0_i32, %c0_i32_0 : i32, i32
  }
  func.func @transform_7(%arg0: i32) -> (i32, i32) {
    %c0_i32 = arith.constant 0 : i32
    %c0_i32_0 = arith.constant 0 : i32
    %c0_i32_1 = arith.constant 0 : i32
    return %c0_i32, %c0_i32_0 : i32, i32
  }
}

</mosaic_0001>

<bundles_post_ra>
// kernel: time_encoder.1
= control target key start
LH: loop header
LB: loop body
LE: loop exit
PB: predicated region body
PF: predicated region fallthrough
CT: control target
= control target key end

     0   :  { %s2087_s0 = inlined_call_operand.vmem [shape: f32[8,1], index: 0, kind: input, shape index: {}]   ;;  %s2088_s1 = inlined_call_operand.hbm [shape: bf16[3,256,256], index: 1, kind: input, shape index: {}]   ;;  %s2089_s2 = inlined_call_operand.hbm [shape: f32[3,2,256], index: 2, kind: input, shape index: {}]   ;;  %s2090_s3 = inlined_call_operand.hbm [shape: bf16[256,128], index: 3, kind: input, shape index: {}]   ;;  %s2091_s4 = inlined_call_operand.hbm [shape: bf16[128,128], index: 4, kind: input, shape index: {}]   ;;  %s2092_s5 = inlined_call_operand.hbm [shape: f32[8,256], index: 5, kind: input, shape index: {}]   ;;  %s2093_s6 = inlined_call_operand.hbm [shape: f32[8,128], index: 6, kind: input, shape index: {}]   ;;  %s2094_s7 = inlined_call_operand.vmem [shape: f32[8,128], index: 7, kind: output, shape index: {}]  }
   0x1   :  { %2098 = sst [smem:[#allocation18_spill]] %s2088_s1 }
   0x2   :  { %2099 = sst [smem:[#allocation19_spill]] %s2090_s3 }
   0x3   :  { %2100 = sst [smem:[#allocation20_spill]] %s2091_s4 }
   0x4   :  { %2101 = sst [smem:[#allocation21_spill]] %s2092_s5 }
   0x5   :  { %12 = vsyncpa [#allocation4], 0 }
   0x6   :  { %14 = vsyncpa [#allocation4 + $0x1], 0 }
   0x7   :  { %15 = vsyncpa [#allocation6], 0 }
   0x8   :  { %17 = vsyncpa [#allocation6 + $0x1], 0 }
   0x9   :  { %18 = vsyncpa [#allocation9], 0 }
   0xa   :  { %19 = vsyncpa [#allocation12], 0  ;;  %s1843_s24 = smov 0   ;;  %s1845_s25 = smov 0  }
   0xb   :  { %s1847_s26 = smov 0   ;;  %s1849_s27 = smov 0  }
   0xc LB: > { %s1862_s28 = sadd.s32 4294967295, %s1787_s27   ;;  %p66_p0 = scmp.ne.s32.totalorder %s1779_s25, %s1775_s24  ;;  %s1787_s27 = sphi %s1849_s27, %s2122_s27   ;;  %s1783_s26 = sphi %s1847_s26, %s2121_s26   ;;  %s1779_s25 = sphi %s1845_s25, %s2120_s25   ;;  %s1775_s24 = sphi %s1843_s24, %s2119_s24  }
   0xd   : > { %p2095_p1 = scmp.eq.s32.totalorder %s1862_s28, 0  ;;  %p1255_p2 = scmp.ge.s32.totalorder %s1787_s27, 1 }
   0xe   : > { %p208_p3 = scmp.lt.s32.totalorder %s1787_s27, 4  ;;  %s1789_s8 = smov [#allocation7]  }
   0xf   : > { %p1871_p5 = por %p2095_p1, %p66_p0  ;;  %s223_s9 = sshll.u32 %s1789_s8, 4  ;;  %s224_s9 = int_to_ptr.vmem [resolvable:$true] %s223_s9 }
  0x10   : > { %p1875_p6 = pnand %p1255_p2, %p208_p3  ;;  %s1790_s11 = smov [#allocation8]  }
  0x11   : > { %s2102_s29 = scalar_select %p1871_p5, 1, 0 }
  0x12   : > { %s2103_s30 = scalar_select %p1875_p6, 1, 0 }
  0x13   : > { %p1417_p7 = pneg %p1875_p6  ;;  %s236_s12 = sshll.u32 %s1790_s11, 4  ;;  %s237_s12 = int_to_ptr.vmem [resolvable:$true] %s236_s12 }
  0x14   : > { %s1791_s13 = smov [#allocation10]   ;;  %s1588_s15 = scalar_lea.vmem %s224_s9, 2048 }
  0x15   : > { %p1883_p8 = pnand %p1417_p7, %p2095_p1  ;;  %s250_s14 = sshll.u32 %s1791_s13, 4  ;;  %s251_s14 = int_to_ptr.vmem [resolvable:$true] %s250_s14 }
  0x16   : > { %p1589_p10 = scmp.ne.s32.totalorder %s224_s9, %s1588_s15  ;;  %p1596_p13 = scmp.lt.s32.totalorder %s224_s9, %s224_s9 }
  0x17   : > { %p1579_p9 = pneg %p1883_p8  ;;  %p1597_p0 = scmp.lt.s32.totalorder %s1588_s15, %s1588_s15 }
  0x19   : > { %p1591_p11 = pnand %p1589_p10, %p1579_p9  ;;  %p1598_p2 = por %p1597_p0, %p1596_p13 }
  0x1b   : > { %p1592_p12 = pneg %p1591_p11 }
  0x1d   : > { %p1599_p3 = pnand %p1598_p2, %p1592_p12 }
  0x1f   : > { %1602 = shalt.err (!%p1599_p3)
}
  0x20   : > { %s1792_s16 = smov 64   ;;  %s1793_s17 = smov 4  }
  0x21   : > { %s2105_s3 = sld [smem:[#allocation19_spill]]  ;;  %s1614_s20 = scalar_lea.vmem %s237_s12, 1024 }
  0x22   : > { %p1615_p7 = scmp.ne.s32.totalorder %s237_s12, %s1614_s20  ;;  %p1622_p4 = scmp.lt.s32.totalorder %s237_s12, %s237_s12 }
  0x23   : > { %p1623_p1 = scmp.lt.s32.totalorder %s1614_s20, %s1614_s20 }
  0x24   : > { %p1617_p10 = pnand %p1615_p7, %p1579_p9 }
  0x25   : > { %p1624_p13 = por %p1623_p1, %p1622_p4 }
  0x26   : > { %p1618_p11 = pneg %p1617_p10 }
  0x27   : > { %1420 = dma.hbm_to_vmem [thread:$0]  (!%p1883_p8), %s2105_s3, 2048, %s224_s9, [#allocation6], %s1792_s16, %s1792_s16, %s1793_s17  }
  0x28   : > { %p1625_p12 = pnand %p1624_p13, %p1618_p11 }
  0x2a   : > { %1628 = shalt.err (!%p1625_p12)
}
  0x2b   : > { %s2106_s4 = sld [smem:[#allocation20_spill]]  ;;  %s1640_s23 = scalar_lea.vmem %s251_s14, 256 }
  0x2c   : > { %p1641_p0 = scmp.ne.s32.totalorder %s251_s14, %s1640_s23  ;;  %p1648_p7 = scmp.lt.s32.totalorder %s251_s14, %s251_s14 }
  0x2d   : > { %p1649_p10 = scmp.lt.s32.totalorder %s1640_s23, %s1640_s23 }
  0x2e   : > { %p1643_p2 = pnand %p1641_p0, %p1579_p9 }
  0x2f   : > { %p1650_p5 = por %p1649_p10, %p1648_p7 }
  0x30   : > { %p1644_p3 = pneg %p1643_p2 }
  0x31   : > { %1423 = dma.hbm_to_vmem [thread:$0]  (!%p1883_p8), %s2106_s4, 1024, %s237_s12, [#allocation9], %s1792_s16, %s1792_s16, %s1793_s17  }
  0x32   : > { %p1651_p1 = pnand %p1650_p5, %p1644_p3 }
  0x34   : > { %1654 = shalt.err (!%p1651_p1)
}
  0x35   : > { %s2107_s5 = sld [smem:[#allocation21_spill]]  ;;  %s1794_s9 = smov [#allocation11]  }
  0x36   : > { %s261_s11 = sshll.u32 %s1794_s9, 4  ;;  %s262_s11 = int_to_ptr.vmem [resolvable:$true] %s261_s11 }
  0x37   : > { %s1666_s12 = scalar_lea.vmem %s262_s11, 128  ;;  %p1674_p12 = scmp.lt.s32.totalorder %s262_s11, %s262_s11 }
  0x38   : > { %p1667_p4 = scmp.ne.s32.totalorder %s262_s11, %s1666_s12  ;;  %p1675_p0 = scmp.lt.s32.totalorder %s1666_s12, %s1666_s12 }
  0x3a   : > { %p1669_p11 = pnand %p1667_p4, %p1579_p9  ;;  %p1676_p5 = por %p1675_p0, %p1674_p12 }
  0x3b   : > { %1426 = dma.hbm_to_vmem [thread:$0]  (!%p1883_p8), %s2107_s5, 256, %s251_s14, [#allocation9]  }
  0x3c   : > { %p1670_p13 = pneg %p1669_p11 }
  0x3e   : > { %p1677_p2 = pnand %p1676_p5, %p1670_p13 }
  0x40   : > { %1680 = shalt.err (!%p1677_p2)
}
  0x41   : > { %1429 = dma.hbm_to_vmem [thread:$0]  (!%p1883_p8), %s2093_s6, 128, %s262_s11, [#allocation12]  }
  0x42   : > { %s1922_s14 = sadd.s32 1, %s1787_s27   ;;  %s53_s16 = sadd.s32 1, %s1783_s26 }
  0x43   : > { %s50_s17 = ssub.s32 %s1787_s27, %s1922_s14  ;;  %p60_p9 = scmp.ne.s32.totalorder %s1783_s26, %s1779_s25 }
  0x44   : > { %p51_p3 = scmp.eq.s32.totalorder %s50_s17, 0  ;;  %p61_p7 = scmp.eq.s32.totalorder %s1787_s27, 0 }
  0x45   : > { %p1441_p10 = scmp.lt.s32.totalorder %s1787_s27, 3  ;;  %s1932_s10 = sand.u32 1, %s1783_s26  }
  0x46   : > { %s1935_s18 = scalar_select %p51_p3, %s1783_s26, %s53_s16  }
  0x47   : > { %p62_p1 = por %p61_p7, %p60_p9  ;;  %s1261_s19 = sshll.u32 %s1932_s10, 8 }
  0x48   : > { %s1342_s20 = sshll.u32 %s1787_s27, 12  ;;  %s2108_s1 = sld [smem:[#allocation18_spill]] }
  0x49   : > { %s276_s24 = scalar_lea.vmem [#allocation3], %s1261_s19  ;;  %p1944_p8 = pnand %p1441_p10, %p62_p1 }
  0x4a   : > { %s283_s8 = sshll.u32 %s276_s24, 4  ;;  %s273_s11 = scalar_lea.sflag [#allocation4], %s1932_s10  ;;  %s1948_s8 = int_to_ptr.vmem [resolvable:$true] %s283_s8 }
  0x4b   : > { %p1683_p11 = pneg %p1944_p8 }
  0x4e   : > { %s1942_s23 = scalar_lea.hbm %s2108_s1, %s1342_s20  ;;  %s1686_s16 = scalar_lea.hbm %s2108_s1, 12288 }
  0x4f   : > { %s1681_s12 = scalar_lea.hbm %s1942_s23, 4096  ;;  %p1687_p0 = scmp.lt.s32.totalorder %s1942_s23, %s2108_s1 }
  0x50   : > { %p1682_p4 = scmp.ne.s32.totalorder %s1942_s23, %s1681_s12  ;;  %p1688_p5 = scmp.lt.s32.totalorder %s1686_s16, %s1681_s12 }
  0x52   : > { %p1684_p13 = pnand %p1683_p11, %p1682_p4  ;;  %p1689_p2 = por %p1688_p5, %p1687_p0 }
  0x54   : > { %p1685_p12 = pneg %p1684_p13 }
  0x56   : > { %p1690_p9 = pnand %p1689_p2, %p1685_p12 }
  0x58   : > { %1693 = shalt.err (!%p1690_p9)
}
  0x59   : > { %s1694_s20 = scalar_lea.vmem %s1948_s8, 4096  ;;  %s1795_s21 = smov [#allocation3]  }
  0x5a   : > { %p1695_p3 = scmp.ne.s32.totalorder %s1948_s8, %s1694_s20  ;;  %s1699_s22 = sshll.u32 %s1795_s21, 4  ;;  %s1700_s22 = int_to_ptr.vmem [resolvable:$false] %s1699_s22 }
  0x5b   : > { %s1701_s24 = scalar_lea.vmem %s1700_s22, 8192  ;;  %p1702_p1 = scmp.lt.s32.totalorder %s1948_s8, %s1700_s22 }
  0x5c   : > { %p1697_p7 = pnand %p1695_p3, %p1683_p11  ;;  %p1703_p4 = scmp.lt.s32.totalorder %s1701_s24, %s1694_s20 }
  0x5e   : > { %p1698_p10 = pneg %p1697_p7  ;;  %p1704_p13 = por %p1703_p4, %p1702_p1 }
  0x60   : > { %p1705_p0 = pnand %p1704_p13, %p1698_p10 }
  0x62   : > { %1708 = shalt.err (!%p1705_p0)
}
  0x63   : > { %s1796_s12 = smov 128   ;;  %s1797_s13 = smov 8  }
  0x64   : > { %1433 = dma.hbm_to_vmem [thread:$0]  (!%p1944_p8), %s1942_s23, 4096, %s1948_s8, %s273_s11, %s1796_s12, %s1796_s12, %s1797_s13  }
  0x65   : > { %s293_s15 = sand.u32 1, %s1787_s27   ;;  %s1264_s16 = sshll.u32 %s1932_s10, 2 }
  0x66   : > { %s1343_s17 = sshll.u32 %s1787_s27, 6  ;;  %s297_s19 = scalar_lea.vmem [#allocation5], %s1264_s16 }
  0x67   : > { %s305_s20 = sshll.u32 %s297_s19, 4  ;;  %s303_s24 = scalar_lea.hbm %s2089_s2, %s1343_s17  ;;  %s306_s20 = int_to_ptr.vmem [resolvable:$true] %s305_s20 }
  0x68   : > { %s294_s1 = scalar_lea.sflag [#allocation6], %s293_s15  ;;  %s1709_s3 = scalar_lea.hbm %s303_s24, 64 }
  0x69   : > { %p1710_p12 = scmp.ne.s32.totalorder %s303_s24, %s1709_s3  ;;  %s1714_s23 = scalar_lea.hbm %s2089_s2, 192 }
  0x6a   : > { %p1715_p9 = scmp.lt.s32.totalorder %s303_s24, %s2089_s2  ;;  %p1716_p3 = scmp.lt.s32.totalorder %s1714_s23, %s1709_s3 }
  0x6b   : > { %p1712_p5 = pnand %p1710_p12, %p1683_p11 }
  0x6c   : > { %p1717_p7 = por %p1716_p3, %p1715_p9 }
  0x6d   : > { %p1713_p2 = pneg %p1712_p5 }
  0x6f   : > { %p1718_p10 = pnand %p1717_p7, %p1713_p2 }
  0x71   : > { %1721 = shalt.err (!%p1718_p10)
}
  0x72   : > { %s1722_s8 = scalar_lea.vmem %s306_s20, 64  ;;  %s1798_s11 = smov [#allocation5]  }
  0x73   : > { %p1723_p1 = scmp.ne.s32.totalorder %s306_s20, %s1722_s8  ;;  %s1727_s12 = sshll.u32 %s1798_s11, 4  ;;  %s1728_s12 = int_to_ptr.vmem [resolvable:$false] %s1727_s12 }
  0x74   : > { %s1729_s4 = scalar_lea.vmem %s1728_s12, 128  ;;  %p1730_p0 = scmp.lt.s32.totalorder %s306_s20, %s1728_s12 }
  0x75   : > { %p1725_p4 = pnand %p1723_p1, %p1683_p11  ;;  %p1731_p12 = scmp.lt.s32.totalorder %s1729_s4, %s1722_s8 }
  0x77   : > { %p1726_p13 = pneg %p1725_p4  ;;  %p1732_p5 = por %p1731_p12, %p1730_p0 }
  0x79   : > { %p1733_p6 = pnand %p1732_p5, %p1726_p13 }
  0x7b   : > { %1736 = shalt.err (!%p1733_p6)
}
  0x7c   : > { %1436 = dma.hbm_to_vmem [thread:$0]  (!%p1944_p8), %s303_s24, 64, %s306_s20, %s294_s1  }
  0x7d   : > { %p2110_p2 = scmp.ne.s32.totalorder %s2103_s30, 0 }
  0x7e   : > { %s316_s3 = sand.u32 (!%p2110_p2), 1, %s1779_s25   ;;  %p2111_p11 = scmp.ne.s32.totalorder (!%p2110_p2), %s2102_s29, 0 }
  0x7f   : > { %314 = sbr.rel (%p2110_p2) target bundleno = 1214 (0x4be), region = 48  ;;  %s1268_s5 = sshll.u32 (!%p2110_p2), %s316_s3, 8 }
  0x80   : > { %s317_s13 = scalar_lea.sflag (!%p2110_p2), [#allocation4], %s316_s3  ;;  %s2000_s15 = scalar_lea.vmem (!%p2110_p2), [#allocation3], %s1268_s5 }
  0x84   : > { %1754 = dma.done.wait (%p2111_p11), %s317_s13, 4096  }
  0x85   : > { %1756 = vsyncadd (%p2111_p11), %s317_s13, 4294963200  ;;  %s325_s16 = sand.u32 1, %s1862_s28   ;;  %s1269_s9 = sshll.u32 %s316_s3, 2 }
  0x86   : > { %s326_s1 = scalar_lea.sflag [#allocation6], %s325_s16  ;;  %s2007_s17 = scalar_lea.vmem [#allocation5], %s1269_s9 }
  0x87   : > { %1758 = dma.done.wait (%p2111_p11), %s326_s1, 64  }
  0x88   : > { %1760 = vsyncadd (%p2111_p11), %s326_s1, 4294967232  ;;  %p2112_p6 = scmp.eq.s32.totalorder %s1862_s28, 0 }
  0x8a   : > { %1762 = dma.done.wait (%p2112_p6), [#allocation6], 2048   ;;  %p2113_p8 = pmov %p2112_p6 }
  0x8b   : > { %p2114_p9 = pmov %p2112_p6 }
  0x8c   : > { %1764 = vsyncadd (%p2113_p8), [#allocation6], 4294965248 }
  0x8d   : > { %1766 = dma.done.wait (%p2114_p9), [#allocation9], 1280   ;;  %p2115_p3 = pmov %p2112_p6 }
  0x8f   : > { %1768 = vsyncadd (%p2115_p3), [#allocation9], 4294966016  ;;  %p2116_p7 = pmov %p2115_p3 }
  0x90   : > { %p2117_p10 = pmov %p2115_p3 }
  0x91   : > { %1770 = dma.done.wait (%p2116_p7), [#allocation12], 128  }
  0x92   : > { %1772 = vsyncadd (%p2117_p10), [#allocation12], 4294967168  ;;  %p2118_p1 = scmp.ne.s32.totalorder %s1862_s28, 0 }
  0x94   : > { %380 = sbr.rel (%p2118_p1) target bundleno = 345 (0x159), region = 76 }
  0x99   : > { %v381_v0 = vld [vmem:[%s2087_s0] sm:$0xff]  ;;  %vm387_vm0 = vcmask 7168   ;;  %v1799_v1 = vmov 0   ;;  %v382_v20 = vld [vmem:[#allocation10] ss:$8 sm:$0x3]  ;;  %v424_v25 = vlaneseq }
  0x9a   : > { %1490 = vset.pattern.permute.xlu0 %v1799_v1  ;;  %v388_v2 = vsel %vm387_vm0, %v381_v0, 0.0  ;;  %v407_v21 = vmul.f32 %v382_v20, %v382_v20  ;;  %v384_v27 = vld [vmem:[#allocation10 + $0x1] ss:$8 sm:$0x3] }
  0x9b   : > { %v389_v3 = vrot.slane %v388_v2, 4  ;;  %v425_v26 = vshrl.u32 %v424_v25, 7  ;;  %v386_v32 = vld [vmem:[#allocation10 + $0x2] ss:$8 sm:$0x3] }
  0x9d   : > { %v390_v4 = vadd.f32 %v389_v3, %v388_v2  ;;  %v426_v30 = vsub.s32 0, %v425_v26  ;;  %v430_v31 = vsub.s32 1, %v425_v26 }
  0x9f   : > { %v391_v5 = vrot.slane %v390_v4, 2  ;;  %v440_v36 = vrot.slane %v386_v32, %v426_v30  ;;  %v444_v37 = vrot.slane %v386_v32, %v430_v31 }
  0xa1   : > { %v392_v6 = vadd.f32 %v391_v5, %v390_v4 }
  0xa3   : > { %v393_v7 = vrot.slane %v392_v6, 1 }
  0xa5   : > { %v394_v8 = vadd.f32 %v393_v7, %v392_v6 }
  0xa7   : > { %v396_v9 = vmul.f32 0.125, %v394_v8 }
  0xa9   : > { %v397_v10 = vsub.f32 %v381_v0, %v396_v9 }
  0xab   : > { %v398_v11 = vmul.f32 %v397_v10, %v397_v10 }
  0xad   : > { %v399_v12 = vsel %vm387_vm0, %v398_v11, 0.0 }
  0xae   : > { %v400_v13 = vrot.slane %v399_v12, 4 }
  0xb0   : > { %v401_v14 = vadd.f32 %v400_v13, %v399_v12 }
  0xb2   : > { %v402_v15 = vrot.slane %v401_v14, 2 }
  0xb4   : > { %v403_v16 = vadd.f32 %v402_v15, %v401_v14 }
  0xb6   : > { %v404_v17 = vrot.slane %v403_v16, 1 }
  0xb8   : > { %v405_v18 = vadd.f32 %v404_v17, %v403_v16 }
  0xba   : > { %v406_v19 = vmul.f32 0.125, %v405_v18 }
  0xbc   : > { %410 = vperm.xlu0 %1490, %v406_v19  }
  0xc0   : > { %420 = vperm.xlu0 %1490, %v397_v10  }
 0x137   : > { %v411_v22 = vpop.permute.xlu0 %410 }
 0x138   : > { %v413_v23 = vmul.f32 %v411_v22, %v407_v21 }
 0x13a   : > { %v414_v24 = vadd.f32 1e-05, %v413_v23 }
 0x13b   : > { %v421_v38 = vpop.permute.xlu0 %420 }
 0x13c   : > { %1491 = vrsqrt.f32 %v414_v24 }
 0x149   : > { %v1492_v28 = vpop.eup %1491 }
 0x14a   : > { %v416_v29 = vmul.f32 %v1492_v28, %v384_v27 }
 0x14c   : > { %v417_v33 = vmul.f32 %v416_v29, %v382_v20 }
 0x14e   : > { %v427_v34 = vrot.slane %v417_v33, %v426_v30  ;;  %v431_v35 = vrot.slane %v417_v33, %v430_v31 }
 0x150   : > { %v434_v39 = vmul.f32 %v427_v34, %v421_v38  ;;  %v435_v40 = vmul.f32 %v431_v35, %v421_v38 }
 0x152   : > { %v447_v41 = vadd.f32 %v440_v36, %v434_v39  ;;  %v448_v42 = vadd.f32 %v444_v37, %v435_v40 }
 0x154   : > { %v449_v43 = vmax.f32 %v447_v41, 0.0  ;;  %v450_v44 = vmax.f32 %v448_v42, 0.0 }
 0x156   : > { %v1344_v45 = vpack.c.bf16 %v450_v44, %v449_v43 }
 0x158   : > { %459 = vst [vmem:[#allocation2] sm:$0xff] %v1344_v45 }
 0x159 PF: > { %v1493_v46 = vld [vmem:[%s2000_s15 + $0x74] ss:$8 sps:$4 sm:$0xff]   ;;  %v1495_v47 = vld [vmem:[%s2000_s15 + $0x70] ss:$8 sps:$4 sm:$0xff]   ;;  %v1496_v48 = vld [vmem:[%s2000_s15 + $0x64] ss:$8 sps:$4 sm:$0xff]  }
 0x15a   : > { %661 = vmatprep.subr.bf16.mxu0 %v1493_v46  ;;  %v1498_v49 = vld [vmem:[%s2000_s15 + $0x60] ss:$8 sps:$4 sm:$0xff]   ;;  %v1499_v50 = vld [vmem:[%s2000_s15 + $0x54] ss:$8 sps:$4 sm:$0xff]   ;;  %v1501_v51 = vld [vmem:[%s2000_s15 + $0x50] ss:$8 sps:$4 sm:$0xff]  }
 0x15b   : > { %662 = vmatpush1.bf16.msra.mxu0 %v1495_v47  ;;  %v1502_v52 = vld [vmem:[%s2000_s15 + $0x44] ss:$8 sps:$4 sm:$0xff]   ;;  %v1504_v53 = vld [vmem:[%s2000_s15 + $0x40] ss:$8 sps:$4 sm:$0xff]   ;;  %v1505_v54 = vld [vmem:[%s2000_s15 + $0x34] ss:$8 sps:$4 sm:$0xff]  }
 0x15c   : > { %663 = vmatprep.subr.bf16.mxu0 %v1496_v48  ;;  %v1507_v55 = vld [vmem:[%s2000_s15 + $0x30] ss:$8 sps:$4 sm:$0xff]   ;;  %v1508_v56 = vld [vmem:[%s2000_s15 + $0x24] ss:$8 sps:$4 sm:$0xff]   ;;  %v1510_v57 = vld [vmem:[%s2000_s15 + $0x20] ss:$8 sps:$4 sm:$0xff]  }
 0x15d   : > { %v1511_v58 = vld [vmem:[%s2000_s15 + $0x14] ss:$8 sps:$4 sm:$0xff]   ;;  %v1513_v61 = vld [vmem:[%s2000_s15 + $0x10] ss:$8 sps:$4 sm:$0xff]   ;;  %v1514_v62 = vld [vmem:[%s2000_s15 + $0x4] ss:$8 sps:$4 sm:$0xff]  }
 0x15e   : > { %v1516_v63 = vld [vmem:[%s2000_s15] ss:$8 sps:$4 sm:$0xff]   ;;  %v1517_v0 = vld [vmem:[%s2000_s15 + $0xf4] ss:$8 sps:$4 sm:$0xff]   ;;  %v1519_v1 = vld [vmem:[%s2000_s15 + $0xf0] ss:$8 sps:$4 sm:$0xff]  }
 0x15f   : > { %664 = vmatpush1.bf16.msra.mxu0 %v1498_v49  ;;  %v493_v59 = vld [vmem:[#allocation2] sm:$0xff]  ;;  %v1520_v2 = vld [vmem:[%s2000_s15 + $0xe4] ss:$8 sps:$4 sm:$0xff]   ;;  %v1522_v3 = vld [vmem:[%s2000_s15 + $0xe0] ss:$8 sps:$4 sm:$0xff]   ;;  %p1311_p4 = scmp.ne.s32.totalorder %s1862_s28, 2 }
 0x160   : > { %665 = vmatprep.subr.bf16.mxu0 %v1499_v50  ;;  %v1277_v60 = vcombine.high %v493_v59, %v493_v59  ;;  %v1523_v4 = vld [vmem:[%s2000_s15 + $0xd4] ss:$8 sps:$4 sm:$0xff]   ;;  %v1525_v5 = vld [vmem:[%s2000_s15 + $0xd0] ss:$8 sps:$4 sm:$0xff]   ;;  %v1526_v6 = vld [vmem:[%s2000_s15 + $0xc4] ss:$8 sps:$4 sm:$0xff]   ;;  %v1276_v16 = vcombine.low %v493_v59, %v493_v59 }
 0x161   : > { %v1528_v7 = vld [vmem:[%s2000_s15 + $0xc0] ss:$8 sps:$4 sm:$0xff]   ;;  %v1529_v8 = vld [vmem:[%s2000_s15 + $0xb4] ss:$8 sps:$4 sm:$0xff]   ;;  %v1531_v9 = vld [vmem:[%s2000_s15 + $0xb0] ss:$8 sps:$4 sm:$0xff]  }
 0x162   : > { %693 = vmatprep.mubr.bf16.mxu0 %v1277_v60  ;;  %v1532_v10 = vld [vmem:[%s2000_s15 + $0xa4] ss:$8 sps:$4 sm:$0xff]   ;;  %v1534_v11 = vld [vmem:[%s2000_s15 + $0xa0] ss:$8 sps:$4 sm:$0xff]   ;;  %v1535_v12 = vld [vmem:[%s2000_s15 + $0x94] ss:$8 sps:$4 sm:$0xff]  }
 0x163   : > { %666 = vmatpush1.bf16.msra.mxu0 %v1501_v51  ;;  %v1537_v13 = vld [vmem:[%s2000_s15 + $0x90] ss:$8 sps:$4 sm:$0xff]   ;;  %v1538_v14 = vld [vmem:[%s2000_s15 + $0x84] ss:$8 sps:$4 sm:$0xff]   ;;  %v1540_v15 = vld [vmem:[%s2000_s15 + $0x80] ss:$8 sps:$4 sm:$0xff]  }
 0x164   : > { %667 = vmatprep.subr.bf16.mxu0 %v1502_v52 }
 0x167   : > { %668 = vmatpush1.bf16.msra.mxu0 %v1504_v53 }
 0x168   : > { %669 = vmatprep.subr.bf16.mxu0 %v1505_v54 }
 0x16b   : > { %670 = vmatpush1.bf16.msra.mxu0 %v1507_v55  ;;  %v1800_v55 = vmov 1983009808  }
 0x16c   : > { %671 = vmatprep.subr.bf16.mxu0 %v1508_v56  ;;  %v743_v56 = vunpack.c.l.s4 %v1800_v55 }
 0x16f   : > { %672 = vmatpush1.bf16.msra.mxu0 %v1510_v57  ;;  %v745_v57 = vlaneseq }
 0x170   : > { %673 = vmatprep.subr.bf16.mxu0 %v1511_v58  ;;  %v744_v58 = vunpack.c.0.s8 %v743_v56 }
 0x171   : > { %v746_v59 = vshrl.u32 %v745_v57, 7 }
 0x173   : > { %674 = vmatpush1.bf16.msra.mxu0 %v1513_v61  ;;  %v747_v61 = vsub.s32 %v744_v58, %v746_v59 }
 0x174   : > { %675 = vmatprep.subr.bf16.mxu0 %v1514_v62 }
 0x177   : > { %676 = vmatpush1.bf16.msra.mxu0 %v1516_v63 }
 0x178   : > { %677 = vmatprep.subr.bf16.mxu0 %v1517_v0  ;;  %v775_v0 = vsub.s32 1, %v746_v59 }
 0x17b   : > { %678 = vmatpush2.bf16.msra.mxu0 %v1519_v1  ;;  %v779_v1 = vsub.s32 3, %v746_v59 }
 0x17c   : > { %679 = vmatprep.subr.bf16.mxu0 %v1520_v2  ;;  %v492_v2 = vld [vmem:[%s2007_s17] sm:$0xf] }
 0x17f   : > { %680 = vmatpush2.bf16.msra.mxu0 %v1522_v3 }
 0x180   : > { %681 = vmatprep.subr.bf16.mxu0 %v1523_v4  ;;  %v2063_v4 = vsub.s32 0, %v746_v59 }
 0x183   : > { %682 = vmatpush2.bf16.msra.mxu0 %v1525_v5  ;;  %v758_v5 = vsub.s32 2, %v746_v59 }
 0x184   : > { %683 = vmatprep.subr.bf16.mxu0 %v1526_v6 }
 0x187   : > { %684 = vmatpush2.bf16.msra.mxu0 %v1528_v7  ;;  %v776_v7 = vrot.slane %v492_v2, %v775_v0 }
 0x188   : > { %685 = vmatprep.subr.bf16.mxu0 %v1529_v8  ;;  %v780_v8 = vrot.slane %v492_v2, %v779_v1 }
 0x18b   : > { %686 = vmatpush2.bf16.msra.mxu0 %v1531_v9 }
 0x18c   : > { %687 = vmatprep.subr.bf16.mxu0 %v1532_v10 }
 0x18f   : > { %688 = vmatpush2.bf16.msra.mxu0 %v1534_v11 }
 0x190   : > { %689 = vmatprep.subr.bf16.mxu0 %v1535_v12 }
 0x193   : > { %690 = vmatpush2.bf16.msra.mxu0 %v1537_v13  ;;  %v786_v13 = vrot.slane %v776_v7, %v775_v0 }
 0x194   : > { %691 = vmatprep.subr.bf16.mxu0 %v1538_v14  ;;  %v790_v14 = vrot.slane %v780_v8, %v775_v0 }
 0x197   : > { %692 = vmatpush2.bf16.msra.mxu0 %v1540_v15 }
 0x19a   : > { %694 = vmatmul.mubr.bf16.vlgmr.msra.gmra.mxu0 %v1276_v16 }
 0x25a   : > { %v695_v17 = vpop.f32.mrf.mxu0 }
 0x25b   : > { %v702_v18 = vrot.slane %v695_v17, 4 }
 0x25c   : > { %v697_v19 = vpop.f32.mrf.mxu0 }
 0x25d   : > { %v703_v20 = vadd.f32 %v702_v18, %v695_v17  ;;  %v708_v21 = vrot.slane %v697_v19, 4 }
 0x25e   : > { %v699_v22 = vpop.f32.mrf.mxu0 }
 0x25f   : > { %v704_v23 = vrot.slane %v703_v20, 2  ;;  %v709_v24 = vadd.f32 %v708_v21, %v697_v19 }
 0x260   : > { %v700_v25 = vpop.f32.mrf.mxu0 }
 0x261   : > { %v705_v26 = vadd.f32 %v704_v23, %v703_v20  ;;  %v710_v27 = vrot.slane %v709_v24, 2 }
 0x263   : > { %v706_v28 = vrot.slane %v705_v26, 1  ;;  %v711_v29 = vadd.f32 %v710_v27, %v709_v24 }
 0x265   : > { %v707_v30 = vadd.f32 %v706_v28, %v705_v26  ;;  %v712_v31 = vrot.slane %v711_v29, 1 }
 0x267   : > { %v715_v32 = vmul.f32 0.125, %v707_v30  ;;  %v713_v33 = vadd.f32 %v712_v31, %v711_v29 }
 0x269   : > { %v717_v34 = vsub.f32 %v695_v17, %v715_v32  ;;  %v716_v35 = vmul.f32 0.125, %v713_v33 }
 0x26b   : > { %v719_v36 = vmul.f32 %v717_v34, %v717_v34  ;;  %v718_v37 = vsub.f32 %v697_v19, %v716_v35 }
 0x26d   : > { %v721_v38 = vrot.slane %v719_v36, 4  ;;  %v720_v39 = vmul.f32 %v718_v37, %v718_v37 }
 0x26f   : > { %v722_v40 = vadd.f32 %v721_v38, %v719_v36  ;;  %v727_v41 = vrot.slane %v720_v39, 4 }
 0x271   : > { %v723_v42 = vrot.slane %v722_v40, 2  ;;  %v728_v43 = vadd.f32 %v727_v41, %v720_v39 }
 0x273   : > { %v724_v44 = vadd.f32 %v723_v42, %v722_v40  ;;  %v729_v45 = vrot.slane %v728_v43, 2 }
 0x275   : > { %v725_v46 = vrot.slane %v724_v44, 1  ;;  %v730_v47 = vadd.f32 %v729_v45, %v728_v43 }
 0x277   : > { %v726_v48 = vadd.f32 %v725_v46, %v724_v44  ;;  %v731_v49 = vrot.slane %v730_v47, 1 }
 0x279   : > { %v733_v50 = vmul.f32 0.125, %v726_v48  ;;  %v732_v51 = vadd.f32 %v731_v49, %v730_v47 }
 0x27b   : > { %v735_v52 = vadd.f32 1e-05, %v733_v50  ;;  %v734_v53 = vmul.f32 0.125, %v732_v51 }
 0x27d   : > { %v736_v54 = vadd.f32 1e-05, %v734_v53  ;;  %1543 = vrsqrt.f32 %v735_v52 }
 0x27f   : > { %1545 = vrsqrt.f32 %v736_v54 }
 0x28a   : > { %v1544_v60 = vpop.eup %1543 }
 0x28c   : > { %v1546_v62 = vpop.eup %1545 }
 0x28d   : > { %v741_v63 = vcombine.low %v1544_v60, %v1546_v62 }
 0x28f   : > { %v748_v3 = vrot.slane %v741_v63, %v747_v61 }
 0x291   : > { %v750_v6 = vmul.f32 %v748_v3, %v492_v2 }
 0x293   : > { %v755_v9 = vrot.slane %v750_v6, %v2063_v4  ;;  %v759_v10 = vrot.slane %v750_v6, %v758_v5 }
 0x295   : > { %v765_v11 = vrot.slane %v755_v9, %v2063_v4  ;;  %v769_v12 = vrot.slane %v759_v10, %v2063_v4 }
 0x297   : > { %v770_v15 = vmul.f32 %v765_v11, %v717_v34  ;;  %v771_v16 = vmul.f32 %v769_v12, %v718_v37 }
 0x299   : > { %v791_v17 = vadd.f32 %v786_v13, %v770_v15  ;;  %v792_v18 = vadd.f32 %v790_v14, %v771_v16 }
 0x29b   : > { %v793_v19 = vmax.f32 %v791_v17, 0.0  ;;  %v794_v20 = vmax.f32 %v792_v18, 0.0  ;;  %807 = sbr.rel (%p1311_p4) target bundleno = 1214 (0x4be), region = 80 }
 0x29d   : > { %v1345_v21 = vpack.c.bf16 %v794_v20, %v793_v19 }
 0x29f   : > { %803 = vst [vmem:[#allocation2] sm:$0xff] %v1345_v21 }
 0x2a0   : > { %v1547_v22 = vld [vmem:[#allocation7 + $0x78] sm:$0xff]   ;;  %v1549_v24 = vld [vmem:[#allocation7 + $0x70] sm:$0xff]   ;;  %v1551_v26 = vld [vmem:[#allocation7 + $0x68] sm:$0xff]   ;;  %v1801_v42 = vmov 0.0   ;;  %vm1802_vm1 = vmmov 0  }
 0x2a1   : > { %v1548_v23 = vld [vmem:[#allocation7 + $0x38] sm:$0xff]   ;;  %1346 = vmatprep.subr.bf16.mxu0 %v1547_v22  ;;  %v1550_v25 = vld [vmem:[#allocation7 + $0x30] sm:$0xff]   ;;  %v1552_v27 = vld [vmem:[#allocation7 + $0x28] sm:$0xff]   ;;  %1377 = vmatprep.subr.bf16.mxu1 %v1801_v42 }
 0x2a2   : > { %1347 = vmatpush3.bf16.msra.mxu0 %v1548_v23  ;;  %v1553_v28 = vld [vmem:[#allocation7 + $0x60] sm:$0xff]   ;;  %v1555_v30 = vld [vmem:[#allocation7 + $0x58] sm:$0xff]   ;;  %v1557_v32 = vld [vmem:[#allocation7 + $0x50] sm:$0xff]   ;;  %1393 = vmatprep.mubr.msk.bf16.mxu1 %vm1802_vm1, %v1801_v42 }
 0x2a3   : > { %1348 = vmatprep.subr.bf16.mxu0 %v1549_v24  ;;  %v1554_v29 = vld [vmem:[#allocation7 + $0x20] sm:$0xff]   ;;  %v1556_v31 = vld [vmem:[#allocation7 + $0x18] sm:$0xff]   ;;  %v1558_v34 = vld [vmem:[#allocation7 + $0x10] sm:$0xff]  }
 0x2a4   : > { %v1559_v36 = vld [vmem:[#allocation7 + $0x48] sm:$0xff]   ;;  %v1561_v38 = vld [vmem:[#allocation7 + $0x40] sm:$0xff]   ;;  %v1565_v41 = vld [vmem:[#allocation8 + $0x38] sm:$0xff]  }
 0x2a5   : > { %v1560_v37 = vld [vmem:[#allocation7 + $0x8] sm:$0xff]   ;;  %v1562_v39 = vld [vmem:[#allocation7] sm:$0xff]   ;;  %1378 = vmatpush3.bf16.msra.mxu1 %v1565_v41  ;;  %v1566_v43 = vld [vmem:[#allocation8 + $0x30] sm:$0xff]  }
 0x2a6   : > { %1349 = vmatpush3.bf16.msra.mxu0 %v1550_v25  ;;  %v808_v33 = vld [vmem:[#allocation2] sm:$0xff]  ;;  %1379 = vmatprep.subr.bf16.mxu1 %v1801_v42  ;;  %v1567_v44 = vld [vmem:[#allocation8 + $0x28] sm:$0xff]   ;;  %v1568_v45 = vld [vmem:[#allocation8 + $0x20] sm:$0xff]  }
 0x2a7   : > { %1350 = vmatprep.subr.bf16.mxu0 %v1551_v26  ;;  %v1313_v35 = vcombine.high %v808_v33, %v808_v33  ;;  %v1312_v40 = vcombine.low %v808_v33, %v808_v33  ;;  %v1569_v46 = vld [vmem:[#allocation8 + $0x18] sm:$0xff]   ;;  %v1570_v47 = vld [vmem:[#allocation8 + $0x10] sm:$0xff]   ;;  %v1571_v48 = vld [vmem:[#allocation8 + $0x8] sm:$0xff]  }
 0x2a8   : > { %v1572_v49 = vld [vmem:[#allocation8] sm:$0xff]   ;;  %v984_v9 = vld [vmem:[#allocation11] sm:$0x1]  ;;  %v1330_v13 = vld [vmem:[#allocation11 + $0x1] ss:$0 sm:$0xff] }
 0x2a9   : > { %976 = vmatprep.mubr.bf16.mxu0 %v1313_v35  ;;  %1380 = vmatpush3.bf16.msra.mxu1 %v1566_v43  ;;  %v1339_v43 = vld [vmem:[#allocation11 + $0x3] ss:$0 sm:$0xff] }
 0x2aa   : > { %1351 = vmatpush3.bf16.msra.mxu0 %v1552_v27  ;;  %1381 = vmatprep.subr.bf16.mxu1 %v1801_v42 }
 0x2ab   : > { %1352 = vmatprep.subr.bf16.mxu0 %v1553_v28 }
 0x2ad   : > { %1382 = vmatpush3.bf16.msra.mxu1 %v1567_v44 }
 0x2ae   : > { %1353 = vmatpush3.bf16.msra.mxu0 %v1554_v29  ;;  %1383 = vmatprep.subr.bf16.mxu1 %v1801_v42 }
 0x2af   : > { %1354 = vmatprep.subr.bf16.mxu0 %v1555_v30 }
 0x2b1   : > { %1384 = vmatpush3.bf16.msra.mxu1 %v1568_v45 }
 0x2b2   : > { %1355 = vmatpush3.bf16.msra.mxu0 %v1556_v31  ;;  %1385 = vmatprep.subr.bf16.mxu1 %v1801_v42 }
 0x2b3   : > { %1356 = vmatprep.subr.bf16.mxu0 %v1557_v32 }
 0x2b5   : > { %1386 = vmatpush3.bf16.msra.mxu1 %v1569_v46 }
 0x2b6   : > { %1357 = vmatpush3.bf16.msra.mxu0 %v1558_v34  ;;  %1387 = vmatprep.subr.bf16.mxu1 %v1801_v42 }
 0x2b7   : > { %1358 = vmatprep.subr.bf16.mxu0 %v1559_v36 }
 0x2b9   : > { %1388 = vmatpush3.bf16.msra.mxu1 %v1570_v47 }
 0x2ba   : > { %1359 = vmatpush3.bf16.msra.mxu0 %v1560_v37  ;;  %1389 = vmatprep.subr.bf16.mxu1 %v1801_v42 }
 0x2bb   : > { %1360 = vmatprep.subr.bf16.mxu0 %v1561_v38 }
 0x2bd   : > { %1390 = vmatpush3.bf16.msra.mxu1 %v1571_v48 }
 0x2be   : > { %1361 = vmatpush3.bf16.msra.mxu0 %v1562_v39  ;;  %1391 = vmatprep.subr.bf16.mxu1 %v1801_v42  ;;  %v1121_v39 = vld [vmem:[#allocation11 + $0x2] sm:$0x1] }
 0x2c1   : > { %977 = vmatmul.mubr.bf16.vlgmr.msra.gmra.mxu0 %v1312_v40  ;;  %1392 = vmatpush3.bf16.msra.mxu1 %v1572_v49 }
 0x381   : > { %v1362_v50 = vpop.f32.mrf.mxu0 }
 0x383   : > { %v1363_v51 = vpop.f32.mrf.mxu0 }
 0x384   : > { %v1364_v52 = vadd.f32 %v1363_v51, %v1362_v50 }
 0x385   : > { %v1365_v53 = vpop.f32.mrf.mxu0 }
 0x386   : > { %v986_v54 = vrot.slane %v1364_v52, 4 }
 0x387   : > { %v1366_v55 = vpop.f32.mrf.mxu0 }
 0x388   : > { %v987_v56 = vadd.f32 %v1364_v52, %v986_v54 }
 0x38a   : > { %v988_v57 = vrot.slane %v987_v56, 2 }
 0x38c   : > { %v989_v58 = vadd.f32 %v988_v57, %v987_v56 }
 0x38e   : > { %v990_v59 = vrot.slane %v989_v58, 1 }
 0x390   : > { %v991_v60 = vadd.f32 %v990_v59, %v989_v58 }
 0x392   : > { %v992_v61 = vmul.f32 0.125, %v991_v60 }
 0x394   : > { %v993_v62 = vsub.f32 %v1364_v52, %v992_v61 }
 0x396   : > { %v994_v63 = vmul.f32 %v993_v62, %v993_v62 }
 0x398   : > { %v995_v0 = vrot.slane %v994_v63, 4 }
 0x39a   : > { %v996_v1 = vadd.f32 %v995_v0, %v994_v63 }
 0x39c   : > { %v997_v2 = vrot.slane %v996_v1, 2 }
 0x39e   : > { %v998_v3 = vadd.f32 %v997_v2, %v996_v1 }
 0x3a0   : > { %v999_v5 = vrot.slane %v998_v3, 1 }
 0x3a2   : > { %v1000_v6 = vadd.f32 %v999_v5, %v998_v3 }
 0x3a4   : > { %v1001_v7 = vmul.f32 0.125, %v1000_v6 }
 0x3a6   : > { %v1002_v8 = vadd.f32 1e-05, %v1001_v7 }
 0x3a8   : > { %1573 = vrsqrt.f32 %v1002_v8 }
 0x3b5   : > { %v1574_v10 = vpop.eup %1573 }
 0x3b6   : > { %v1004_v11 = vmul.f32 %v1574_v10, %v984_v9 }
 0x3b8   : > { %v1008_v12 = vrot.slane %v1004_v11, %v2063_v4 }
 0x3ba   : > { %v1009_v14 = vmul.f32 %v1008_v12, %v993_v62 }
 0x3bc   : > { %v1014_v15 = vadd.f32 %v1330_v13, %v1009_v14 }
 0x3be   : > { %v1015_v16 = vmax.f32 %v1014_v15, 0.0 }
 0x3c0   : > { %v1016_v17 = vpack.c.bf16 %v1015_v16, %v1015_v16 }
 0x3c2   : > { %1394 = vmatmul.mubr.bf16.vlgmr.msra.gmra.mxu1 %v1016_v17 }
 0x482   : > { %v1115_v18 = vpop.f32.mrf.mxu1 }
 0x483   : > { %v1123_v19 = vrot.slane %v1115_v18, 4 }
 0x484   : > { %v1395_v20 = vpop.f32.mrf.mxu1 }
 0x485   : > { %v1124_v21 = vadd.f32 %v1123_v19, %v1115_v18 }
 0x486   : > { %v1118_v22 = vpop.f32.mrf.mxu1 }
 0x487   : > { %v1125_v23 = vrot.slane %v1124_v21, 2 }
 0x488   : > { %v1396_v24 = vpop.f32.mrf.mxu1 }
 0x489   : > { %v1126_v25 = vadd.f32 %v1125_v23, %v1124_v21 }
 0x48b   : > { %v1127_v26 = vrot.slane %v1126_v25, 1 }
 0x48d   : > { %v1128_v27 = vadd.f32 %v1127_v26, %v1126_v25 }
 0x48f   : > { %v1129_v28 = vmul.f32 0.125, %v1128_v27 }
 0x491   : > { %v1130_v29 = vsub.f32 %v1115_v18, %v1129_v28 }
 0x493   : > { %v1131_v30 = vmul.f32 %v1130_v29, %v1130_v29 }
 0x495   : > { %v1132_v31 = vrot.slane %v1131_v30, 4 }
 0x497   : > { %v1133_v32 = vadd.f32 %v1132_v31, %v1131_v30 }
 0x499   : > { %v1134_v33 = vrot.slane %v1133_v32, 2 }
 0x49b   : > { %v1135_v34 = vadd.f32 %v1134_v33, %v1133_v32 }
 0x49d   : > { %v1136_v35 = vrot.slane %v1135_v34, 1 }
 0x49f   : > { %v1137_v36 = vadd.f32 %v1136_v35, %v1135_v34 }
 0x4a1   : > { %v1138_v37 = vmul.f32 0.125, %v1137_v36 }
 0x4a3   : > { %v1139_v38 = vadd.f32 1e-05, %v1138_v37 }
 0x4a5   : > { %1575 = vrsqrt.f32 %v1139_v38 }
 0x4b2   : > { %v1576_v40 = vpop.eup %1575 }
 0x4b3   : > { %v1141_v41 = vmul.f32 %v1576_v40, %v1121_v39 }
 0x4b5   : > { %v1145_v42 = vrot.slane %v1141_v41, %v2063_v4 }
 0x4b7   : > { %v1146_v44 = vmul.f32 %v1145_v42, %v1130_v29 }
 0x4b9   : > { %v1151_v45 = vadd.f32 %v1339_v43, %v1146_v44 }
 0x4bb   : > { %v1152_v46 = vmax.f32 %v1151_v45, 0.0 }
 0x4bd   : > { %1153 = vst [vmem:[%s2094_s7] sm:$0xff] %v1152_v46 }
 0x4be PF: > { %p22_p13 = scmp.ge.s32.totalorder %s1922_s14, 5   ;;  %s2119_s24 = smov %s1779_s25 }
 0x4bf   : > { %s2120_s25 = smov %s1783_s26  ;;  %s2121_s26 = smov %s1935_s18 }
 0x4c0   : > { %s2122_s27 = smov %s1922_s14  ;;  %24 = sbr.rel (!%p22_p13) target bundleno = 12 (0xc), region = 123 }
 0x4c5   :  { %1165 = vsyncpa [#allocation4], 1 }
 0x4c6   :  { %1167 = vsyncpa [#allocation4 + $0x1], 1 }
 0x4c7   :  { %1168 = vsyncpa [#allocation6], 1 }
 0x4c8   :  { %1170 = vsyncpa [#allocation6 + $0x1], 1 }
 0x4c9   :  { %1171 = vsyncpa [#allocation9], 1 }
 0x4ca   :  { %1172 = vsyncpa [#allocation12], 1 }

</bundles_post_ra>
